<compile_context>
chip_gen: v5e
topology: v5e:2x2
jax: 0.10.0
libtpu: 0.0.40
codegen_flags: <defaults>
</compile_context>

<pallas_src>
import functools

import jax
import jax.numpy as jnp
from jax.experimental import pallas as pl
from jax.experimental.pallas import tpu as pltpu


_INV_SQRT2 = 0.7071067811865476


def _gelu_exact(x):
    # Exact GELU: 0.5 * x * (1 + erf(x / sqrt(2))) -- matches torch.nn.GELU default.
    return 0.5 * x * (1.0 + jax.lax.erf(x * _INV_SQRT2))


def _round_up(x, m):
    return ((x + m - 1) // m) * m


def _cdiv(a, b):
    return -(-a // b)


def _query_vmem_capacity():
    # 128 MiB on v5e/v6e, 64 MiB per TensorCore on v7x; conservative fallback.
    try:
        return int(pltpu.get_tpu_info().vmem_capacity_bytes)
    except Exception:
        return 64 * 1024 * 1024


_VMEM_CAP = _query_vmem_capacity()


def mlp_kernel(x_ref, w1_ref, b1_ref, w2_ref, b2_ref, o_ref, *scratch, n_k):
    """One (row-tile i, hidden-tile k) step of the fused fc1 -> GELU -> fc2 pipeline.

    x_ref:  (tm, Din)      row tile (resident across k), cast to MXU dtype in-kernel
    w1_ref: (Din, th)      fc1 weight hidden-tile
    b1_ref: (1, th)        fc1 bias hidden-tile (f32)
    w2_ref: (th, Dout_p)   fc2 weight hidden-tile
    b2_ref: (1, Dout_p)    fc2 bias (f32)
    o_ref:  (tm, Dout_p)   output row tile (written on the last k only)
    scratch: () if n_k == 1 else (f32 (tm, Dout_p) accumulator,)
    """
    # fc1 partial on the MXU (f32 accumulate); bias + exact GELU on the VPU.
    h = jnp.dot(x_ref[...].astype(w1_ref.dtype), w1_ref[...],
                preferred_element_type=jnp.float32)
    h = _gelu_exact(h + b1_ref[...])
    # fc2 partial for this hidden tile (cast back to the MXU compute dtype).
    part = jnp.dot(h.astype(w2_ref.dtype), w2_ref[...],
                   preferred_element_type=jnp.float32)

    if n_k == 1:
        # Weights fully resident: no accumulator at all, write the output directly.
        o_ref[...] = (part + b2_ref[...]).astype(o_ref.dtype)
    else:
        acc_ref, = scratch
        k = pl.program_id(1)

        @pl.when(k == 0)
        def _():
            acc_ref[...] = part                      # plain write, no RMW on first tile

        @pl.when(jnp.logical_and(k > 0, k < n_k - 1))
        def _():
            acc_ref[...] += part

        @pl.when(k == n_k - 1)
        def _():
            # Last hidden tile fused into the epilogue: saves one (tm, Dout_p) f32
            # accumulator read+write per row tile; b2 is added exactly once.
            o_ref[...] = (acc_ref[...] + part + b2_ref[...]).astype(o_ref.dtype)


def prepare_mlp_params(w1, b1, w2, b2, compute_dtype=jnp.bfloat16):
    """Cast + zero-pad the weights ONCE, outside the per-call hot path.

    bf16 is the default compute dtype (fast MXU path); accumulation in the kernel
    stays f32.  Weights are stored pre-transposed w.r.t. torch.nn.Linear:
    w1: (Din, H), w2: (H, Dout), so the kernel computes x @ W directly.
    Zero padding of hidden / output dims is exact through GELU and both matmuls.
    """
    Din, H = w1.shape
    Dout = w2.shape[1]
    cdt = jnp.dtype(compute_dtype)
    Hp = _round_up(H, 128)
    Dout_p = _round_up(Dout, 128)            # lane-dense output -> unmasked stores
    w1p = jnp.pad(w1.astype(cdt), ((0, 0), (0, Hp - H)))
    b1p = jnp.pad(b1.astype(jnp.float32), ((0, Hp - H),)).reshape(1, Hp)
    w2p = jnp.pad(w2.astype(cdt), ((0, Hp - H), (0, Dout_p - Dout)))
    b2p = jnp.pad(b2.astype(jnp.float32), ((0, Dout_p - Dout),)).reshape(1, Dout_p)
    return w1p, b1p, w2p, b2p


@functools.partial(
    jax.jit,
    static_argnames=("out_features", "tm_max", "th_max", "weight_resident"))
def mlp_forward(x, w1p, b1p, w2p, b2p, *, out_features=None,
                tm_max=1024, th_max=2048, weight_resident=None):
    """x: (B, S, Din); prepared params from prepare_mlp_params.

    Returns (B, S, out_features).  `weight_resident`: None = auto (fit in VMEM),
    True/False forces residency / streaming of the hidden axis.
    """
    B, S, Din = x.shape
    Hp = w1p.shape[1]
    Dout_p = w2p.shape[1]
    Dout = Dout_p if out_features is None else out_features
    M = B * S

    out_dtype = x.dtype
    cdt = w1p.dtype
    cbytes = jnp.dtype(cdt).itemsize
    xbytes = jnp.dtype(x.dtype).itemsize
    obytes = jnp.dtype(out_dtype).itemsize
    # bf16 packs 16 rows per vreg along sublanes -> 16-aligned row tiles (8 for f32).
    row_align = 8 if cbytes >= 4 else 16

    # ---------------- row tiling ----------------
    # Balanced tiles (minimal padding); at least 2 row tiles when M allows so the
    # "parallel" grid axis can be sharded across both v7x TensorCores.
    min_tiles = 2 if M >= 2 * row_align else 1
    n_i = max(min_tiles, _cdiv(M, tm_max))
    tm = _round_up(_cdiv(M, n_i), row_align)

    # ---------------- VMEM budget & hidden tiling ----------------
    budget = int(0.8 * _VMEM_CAP)            # headroom for Mosaic internal scratch

    def working_set(tm_, th_, w_bufs):
        w_bytes = w_bufs * ((Din * th_ + th_ * Dout_p) * cbytes + (th_ + Dout_p) * 4)
        x_bytes = 2 * tm_ * Din * xbytes      # double-buffered row tile
        o_bytes = 2 * tm_ * Dout_p * obytes   # double-buffered output tile
        a_bytes = tm_ * Dout_p * 4            # f32 accumulator (streaming mode)
        return w_bytes + x_bytes + o_bytes + a_bytes

    if weight_resident is None:
        resident_db = working_set(tm, Hp, 2) <= budget
        resident_sb = (not resident_db) and (working_set(tm, Hp, 1) <= budget)
    elif weight_resident:
        resident_db, resident_sb = True, False
    else:
        resident_db, resident_sb = False, False

    single_buffer_w = resident_sb
    if resident_db or resident_sb:
        # Hold W1/W2 (+biases) resident: their index_maps become grid-invariant, so
        # they are DMA'd from HBM once and reused across all row tiles.
        th, n_k = Hp, 1
    else:
        # Stream the hidden axis: largest 128-multiple tile dividing Hp that fits
        # both th_max and the VMEM budget (fewer k steps -> fewer acc RMWs).
        th = 128
        for t in range(128, Hp + 1, 128):
            if Hp % t == 0 and t <= th_max and working_set(tm, t, 2) <= budget:
                th = t
        n_k = Hp // th

    # Shrink the row tile if the working set still exceeds the budget (rare).
    w_bufs = 1 if single_buffer_w else 2
    while tm > row_align and working_set(tm, th, w_bufs) > budget:
        tm = max(row_align, _round_up(tm // 2, row_align))
    n_i = _cdiv(M, tm)
    Mp = n_i * tm

    # VMEM limit clamped to the device capacity (v7x has only 64 MiB per TC).
    vmem_limit = int(min(_VMEM_CAP,
                         max(32 * 1024 * 1024,
                             int(1.2 * working_set(tm, th, w_bufs)))))

    # ------------- per-call input prep (rows only; weights already prepped) -------
    x2d = x.reshape(M, Din)
    if Mp != M:
        x2d = jnp.pad(x2d, ((0, Mp - M), (0, 0)))   # zero rows are exact no-ops

    # ---------------- specs ----------------
    # Single-buffer the grid-invariant weight specs only when needed to fit (v7x).
    wkw = dict(pipeline_mode=pl.Buffered(1)) if single_buffer_w else {}
    in_specs = [
        pl.BlockSpec((tm, Din), lambda i, k: (i, 0)),               # x row tile
        pl.BlockSpec((Din, th), lambda i, k: (0, k), **wkw),        # W1 hidden tile
        pl.BlockSpec((1, th), lambda i, k: (0, k), **wkw),          # b1 hidden tile
        pl.BlockSpec((th, Dout_p), lambda i, k: (k, 0), **wkw),     # W2 hidden tile
        pl.BlockSpec((1, Dout_p), lambda i, k: (0, 0), **wkw),      # b2
    ]
    out_spec = pl.BlockSpec((tm, Dout_p), lambda i, k: (i, 0))
    scratch = () if n_k == 1 else (pltpu.VMEM((tm, Dout_p), jnp.float32),)

    w_stream = 1 if n_k == 1 else n_i      # resident weights hit HBM exactly once
    cost = pl.CostEstimate(
        flops=2 * Mp * (Din * Hp + Hp * Dout_p),
        transcendentals=Mp * Hp,
        bytes_accessed=(Mp * Din * xbytes
                        + w_stream * (Din * Hp + Hp * Dout_p) * cbytes
                        + (Hp + Dout_p) * 4
                        + Mp * Dout_p * obytes),
    )

    out2d = pl.pallas_call(
        functools.partial(mlp_kernel, n_k=n_k),
        out_shape=jax.ShapeDtypeStruct((Mp, Dout_p), out_dtype),
        grid_spec=pltpu.PrefetchScalarGridSpec(
            num_scalar_prefetch=0,
            grid=(n_i, n_k),
            in_specs=in_specs,
            out_specs=out_spec,
            scratch_shapes=scratch,
        ),
        compiler_params=pltpu.CompilerParams(
            dimension_semantics=("parallel", "arbitrary"),
            vmem_limit_bytes=vmem_limit,
        ),
        cost_estimate=cost,
    )(x2d, w1p, b1p, w2p, b2p)

    return out2d[:M, :Dout].reshape(B, S, Dout)


def init_mlp_params(key, in_features, hidden_features, out_features, dtype=jnp.float32):
    """Deterministic synthetic init. Weights stored pre-transposed:
    w1: (in, hidden), w2: (hidden, out) so the kernel does x @ W directly."""
    k1, k2, k3, k4 = jax.random.split(key, 4)
    w1 = jax.random.normal(k1, (in_features, hidden_features), dtype) * 0.02
    b1 = jax.random.normal(k2, (hidden_features,), dtype) * 0.02
    w2 = jax.random.normal(k3, (hidden_features, out_features), dtype) * 0.02
    b2 = jax.random.normal(k4, (out_features,), dtype) * 0.02
    return w1, b1, w2, b2


def mlp_reference(x, w1, b1, w2, b2):
    h = jnp.einsum("bsd,dh->bsh", x, w1) + b1
    h = _gelu_exact(h)
    return jnp.einsum("bsh,ho->bso", h, w2) + b2


if __name__ == "__main__":
    key = jax.random.PRNGKey(0)

    # ---- test 1: small ViT/CLIP-like shapes, f32 compute (exact vs reference) ----
    B, S = 2, 8
    Din, H, Dout = 32, 64, 32
    kx, kp = jax.random.split(key)
    x = jax.random.normal(kx, (B, S, Din), jnp.float32)
    w1, b1, w2, b2 = init_mlp_params(kp, Din, H, Dout)
    ref = mlp_reference(x, w1, b1, w2, b2)

    prep_f32 = prepare_mlp_params(w1, b1, w2, b2, compute_dtype=jnp.float32)
    out = jax.block_until_ready(mlp_forward(x, *prep_f32, out_features=Dout))
    assert out.shape == (B, S, Dout)
    assert jnp.allclose(out, ref, atol=1e-5, rtol=1e-5), "f32 mismatch vs reference"

    # ---- test 2: default bf16 MXU fast path (f32 accumulation), loose tolerance --
    prep_bf16 = prepare_mlp_params(w1, b1, w2, b2)      # bf16 is the default
    out_bf = jax.block_until_ready(mlp_forward(x, *prep_bf16, out_features=Dout))
    assert out_bf.shape == (B, S, Dout)
    assert jnp.allclose(out_bf, ref, atol=2e-2, rtol=5e-2), "bf16 mismatch vs reference"

    # ---- test 3: row tiling, forced hidden-axis streaming/accumulation, Dout pad -
    B2, S2 = 2, 40                       # M = 80 -> two balanced 40-row tiles
    Din2, H2, Dout2 = 64, 256, 96        # 2 hidden tiles of 128, Dout padded to 128
    kx2, kp2 = jax.random.split(kp)
    x2 = jax.random.normal(kx2, (B2, S2, Din2), jnp.float32)
    p2 = init_mlp_params(kp2, Din2, H2, Dout2)
    ref2 = mlp_reference(x2, *p2)
    prep2 = prepare_mlp_params(*p2, compute_dtype=jnp.float32)
    out2 = jax.block_until_ready(
        mlp_forward(x2, *prep2, out_features=Dout2, th_max=128,
                    weight_resident=False))
    assert out2.shape == (B2, S2, Dout2)
    assert jnp.allclose(out2, ref2, atol=1e-4, rtol=1e-4), "streamed mismatch vs reference"

    print("KERNEL_OK")
</pallas_src>

<mosaic_0001>
module attributes {stable_mosaic.version = 11 : i64} {
  func.func @mlp_kernel(%arg0: i32, %arg1: i32, %arg2: memref<8x32xf32, #tpu.memory_space<vmem>>, %arg3: memref<32x128xf32, #tpu.memory_space<vmem>>, %arg4: memref<1x128xf32, #tpu.memory_space<vmem>>, %arg5: memref<128x128xf32, #tpu.memory_space<vmem>>, %arg6: memref<1x128xf32, #tpu.memory_space<vmem>>, %arg7: memref<8x128xf32, #tpu.memory_space<vmem>>) attributes {dimension_semantics = [#tpu.dimension_semantics<parallel>, #tpu.dimension_semantics<arbitrary>], iteration_bounds = array<i64: 2, 1>, scalar_prefetch = 0 : i64, scratch_operands = 0 : i64, tpu.core_type = #tpu.core_type<tc>, window_params = [{transform_indices = @transform_0, window_bounds = array<i64: 8, 32>}, {transform_indices = @transform_1, window_bounds = array<i64: 32, 128>}, {transform_indices = @transform_2, window_bounds = array<i64: 1, 128>}, {transform_indices = @transform_3, window_bounds = array<i64: 128, 128>}, {pipeline_mode = #tpu.pipeline_mode<synchronous>, transform_indices = @transform_4, window_bounds = array<i64: 1, 128>}, {transform_indices = @transform_5, window_bounds = array<i64: 8, 128>}]} {
    %c0 = arith.constant 0 : index
    %c0_0 = arith.constant 0 : index
    %0 = vector.load %arg2[%c0, %c0_0] : memref<8x32xf32, #tpu.memory_space<vmem>>, vector<8x32xf32>
    %c0_1 = arith.constant 0 : index
    %c0_2 = arith.constant 0 : index
    %1 = vector.load %arg3[%c0_1, %c0_2] : memref<32x128xf32, #tpu.memory_space<vmem>>, vector<32x128xf32>
    %cst = arith.constant dense<0.000000e+00> : vector<8x128xf32>
    %2 = tpu.matmul %0, %1, %cst {dimension_numbers = #tpu.dot_dimension_numbers<[1], [0], [0], [1], [0, 0, 1, 1], [], []>} : vector<8x32xf32>, vector<32x128xf32>, vector<8x128xf32> -> vector<8x128xf32>
    %c0_3 = arith.constant 0 : index
    %c0_4 = arith.constant 0 : index
    %3 = vector.load %arg4[%c0_3, %c0_4] : memref<1x128xf32, #tpu.memory_space<vmem>>, vector<1x128xf32>
    %4 = vector.broadcast %3 : vector<1x128xf32> to vector<8x128xf32>
    %5 = arith.addf %2, %4 : vector<8x128xf32>
    %cst_5 = arith.constant 5.000000e-01 : f32
    %6 = vector.broadcast %cst_5 : f32 to vector<8x128xf32>
    %7 = arith.mulf %6, %5 : vector<8x128xf32>
    %cst_6 = arith.constant 0.707106769 : f32
    %8 = vector.broadcast %cst_6 : f32 to vector<8x128xf32>
    %9 = arith.mulf %5, %8 : vector<8x128xf32>
    %10 = math.erf %9 : vector<8x128xf32>
    %cst_7 = arith.constant 1.000000e+00 : f32
    %11 = vector.broadcast %cst_7 : f32 to vector<8x128xf32>
    %12 = arith.addf %11, %10 : vector<8x128xf32>
    %13 = arith.mulf %7, %12 : vector<8x128xf32>
    %c0_8 = arith.constant 0 : index
    %c0_9 = arith.constant 0 : index
    %14 = vector.load %arg5[%c0_8, %c0_9] : memref<128x128xf32, #tpu.memory_space<vmem>>, vector<128x128xf32>
    %cst_10 = arith.constant dense<0.000000e+00> : vector<8x128xf32>
    %15 = tpu.matmul %13, %14, %cst_10 {dimension_numbers = #tpu.dot_dimension_numbers<[1], [0], [0], [1], [0, 0, 1, 1], [], []>} : vector<8x128xf32>, vector<128x128xf32>, vector<8x128xf32> -> vector<8x128xf32>
    %c0_11 = arith.constant 0 : index
    %c0_12 = arith.constant 0 : index
    %16 = vector.load %arg6[%c0_11, %c0_12] : memref<1x128xf32, #tpu.memory_space<vmem>>, vector<1x128xf32>
    %17 = vector.broadcast %16 : vector<1x128xf32> to vector<8x128xf32>
    %18 = arith.addf %15, %17 : vector<8x128xf32>
    %c0_13 = arith.constant 0 : index
    %c0_14 = arith.constant 0 : index
    %19 = vector.load %arg7[%c0_13, %c0_14] : memref<8x128xf32, #tpu.memory_space<vmem>>, vector<8x128xf32>
    tpu.vector_store %arg7[%c0_13, %c0_14], %18 {strides = array<i32>} : memref<8x128xf32, #tpu.memory_space<vmem>>, vector<8x128xf32>,
    return
  }
  func.func @transform_0(%arg0: i32, %arg1: i32) -> (i32, i32) {
    %c0_i32 = arith.constant 0 : i32
    %c0_i32_0 = arith.constant 0 : i32
    return %arg0, %c0_i32 : i32, i32
  }
  func.func @transform_1(%arg0: i32, %arg1: i32) -> (i32, i32) {
    %c0_i32 = arith.constant 0 : i32
    %c0_i32_0 = arith.constant 0 : i32
    return %c0_i32, %arg1 : i32, i32
  }
  func.func @transform_2(%arg0: i32, %arg1: i32) -> (i32, i32) {
    %c0_i32 = arith.constant 0 : i32
    %c0_i32_0 = arith.constant 0 : i32
    return %c0_i32, %arg1 : i32, i32
  }
  func.func @transform_3(%arg0: i32, %arg1: i32) -> (i32, i32) {
    %c0_i32 = arith.constant 0 : i32
    %c0_i32_0 = arith.constant 0 : i32
    return %arg1, %c0_i32 : i32, i32
  }
  func.func @transform_4(%arg0: i32, %arg1: i32) -> (i32, i32) {
    %c0_i32 = arith.constant 0 : i32
    %c0_i32_0 = arith.constant 0 : i32
    %c0_i32_1 = arith.constant 0 : i32
    return %c0_i32, %c0_i32_0 : i32, i32
  }
  func.func @transform_5(%arg0: i32, %arg1: i32) -> (i32, i32) {
    %c0_i32 = arith.constant 0 : i32
    %c0_i32_0 = arith.constant 0 : i32
    return %arg0, %c0_i32 : i32, i32
  }
}

</mosaic_0001>

<bundles_post_ra>
// kernel: mlp_forward.1
= control target key start
LH: loop header
LB: loop body
LE: loop exit
PB: predicated region body
PF: predicated region fallthrough
CT: control target
= control target key end

     0   :  { %10 = vsyncpa [#allocation3], 0  ;;  %s946_s0 = inlined_call_operand.hbm [shape: f32[16,32], index: 0, kind: input, shape index: {}]   ;;  %s947_s1 = inlined_call_operand.hbm [shape: f32[32,128], index: 1, kind: input, shape index: {}]   ;;  %s948_s2 = inlined_call_operand.vmem [shape: f32[1,128], index: 2, kind: input, shape index: {}]   ;;  %s949_s3 = inlined_call_operand.hbm [shape: f32[128,128], index: 3, kind: input, shape index: {}]   ;;  %s950_s4 = inlined_call_operand.vmem [shape: f32[1,128], index: 4, kind: input, shape index: {}]   ;;  %s951_s5 = inlined_call_operand.vmem [shape: f32[16,128], index: 5, kind: output, shape index: {}]  }
   0x1   :  { %12 = vsyncpa [#allocation3 + $0x1], 0 }
   0x2   :  { %13 = vsyncpa [#allocation5], 0  ;;  %s823_s18 = smov 0   ;;  %s825_s19 = smov 0  }
   0x3   :  { %s827_s20 = smov 0   ;;  %s829_s21 = smov 0  }
   0x4   :  { %s831_s22 = smov 0   ;;  %s833_s23 = smov 0  }
   0x5 LB: > { %s543_s24 = sadd.s32 4294967295, %s787_s23   ;;  %p545_p0 = scmp.ge.s32.totalorder %s787_s23, 1  ;;  %s787_s23 = sphi %s833_s23, %s19_s23   ;;  %s783_s22 = sphi %s831_s22, %s960_s22   ;;  %s779_s21 = sphi %s829_s21, %s959_s21   ;;  %s775_s20 = sphi %s827_s20, %s958_s20   ;;  %s771_s19 = sphi %s825_s19, %s957_s19   ;;  %s767_s18 = sphi %s823_s18, %s956_s18  }
   0x6   : > { %p855_p1 = scmp.eq.s32.totalorder %s543_s24, 0  ;;  %p187_p2 = scmp.lt.s32.totalorder %s787_s23, 3 }
   0x7   : > { %s200_s28 = sshll.u32 %s947_s1, 4  ;;  %s789_s30 = smov [#allocation4]   ;;  %s201_s28 = int_to_ptr.hbm [resolvable:$true] %s200_s28 }
   0x8   : > { %p863_p3 = pnand %p545_p0, %p187_p2  ;;  %s202_s6 = sshll.u32 %s789_s30, 4  ;;  %s203_s6 = int_to_ptr.vmem [resolvable:$true] %s202_s6 }
   0x9   : > { %s223_s9 = sshll.u32 %s949_s3, 4  ;;  %s790_s10 = smov 128   ;;  %s224_s9 = int_to_ptr.hbm [resolvable:$true] %s223_s9 }
   0xa   : > { %p571_p4 = pneg %p863_p3  ;;  %s791_s11 = smov 8  }
   0xb   : > { %s792_s12 = smov [#allocation6]   ;;  %s31_s14 = sadd.s32 1, %s783_s22 }
   0xc   : > { %p572_p5 = pnand %p571_p4, %p855_p1  ;;  %s225_s13 = sshll.u32 %s792_s12, 4  ;;  %s226_s13 = int_to_ptr.vmem [resolvable:$true] %s225_s13 }
   0xd   : > { %s38_s15 = sadd.s32 1, %s775_s20  ;;  %p33_p6 = scmp.ge.s32.totalorder %s31_s14, 2 }
   0xe   : > { %574 = dma.hbm_to_vmem [thread:$0]  (!%p572_p5), %s201_s28, 512, %s203_s6, [#allocation5], %s790_s10, %s790_s10, %s791_s11  }
   0xf   : > { %577 = dma.hbm_to_vmem [thread:$0]  (!%p572_p5), %s224_s9, 2048, %s226_s13, [#allocation5], %s790_s10, %s790_s10, %s791_s11  }
  0x10   : > { %p45_p7 = scmp.ne.s32.totalorder %s775_s20, %s771_s19  ;;  %p46_p8 = scmp.eq.s32.totalorder %s787_s23, 0 }
  0x11   : > { %p51_p9 = scmp.ne.s32.totalorder %s771_s19, %s767_s18  ;;  %s962_s14 = smov (%p33_p6, %s31_s14), 0 }
  0x12   : > { %p883_p10 = por %p46_p8, %p45_p7  ;;  %s35_s24 = ssub.s32 %s783_s22, %s962_s14 }
  0x13   : > { %p889_p11 = por %p855_p1, %p51_p9  ;;  %p584_p12 = scmp.lt.s32.totalorder %s787_s23, 2 }
  0x14   : > { %p36_p13 = scmp.eq.s32.totalorder %s35_s24, 0  ;;  %s242_s26 = sand.u32 1, %s775_s20  }
  0x15   : > { %s550_s27 = sshll.u32 %s242_s26, 3  ;;  %s551_s18 = sshll.u32 %s783_s22, 3 }
  0x16   : > { %s898_s28 = scalar_select %p36_p13, %s775_s20, %s38_s15  }
  0x17   : > { %s250_s7 = scalar_lea.hbm %s946_s0, %s551_s18  ;;  %s246_s8 = scalar_lea.vmem [#allocation2], %s550_s27 }
  0x18   : > { %s254_s9 = sshll.u32 %s246_s8, 4  ;;  %s252_s10 = sshll.u32 %s250_s7, 4  ;;  %s255_s9 = int_to_ptr.vmem [resolvable:$true] %s254_s9  ;;  %s253_s10 = int_to_ptr.hbm [resolvable:$true] %s252_s10 }
  0x19   : > { %p579_p0 = pnand %p584_p12, %p883_p10  ;;  %s243_s11 = scalar_lea.sflag [#allocation3], %s242_s26 }
  0x1a   : > { %263 = sbr.rel (%p863_p3) target bundleno = 350 (0x15e), region = 40  ;;  %s265_s12 = sand.u32 (!%p863_p3), 1, %s771_s19  }
  0x1b   : > { %581 = dma.hbm_to_vmem [thread:$0]  (!%p579_p0), %s253_s10, 128, %s255_s9, %s243_s11  }
  0x1c   : > { %s553_s13 = sshll.u32 (!%p863_p3), %s265_s12, 3  ;;  %s266_s15 = scalar_lea.sflag (!%p863_p3), [#allocation3], %s265_s12 }
  0x1d   : > { %s269_s24 = scalar_lea.vmem (!%p863_p3), [#allocation2], %s553_s13 }
  0x1f   : > { %758 = dma.done.wait (%p889_p11), %s266_s15, 128  }
  0x20   : > { %760 = vsyncadd (%p889_p11), %s266_s15, 4294967168 }
  0x21   : > { %762 = dma.done.wait (%p855_p1), [#allocation5], 2560  }
  0x22   : > { %764 = vsyncadd (%p855_p1), [#allocation5], 4294964736  ;;  %v321_v0 = vld [vmem:[#allocation4 + $0x18] sm:$0xff]  ;;  %v320_v1 = vld [vmem:[#allocation4 + $0x10] sm:$0xff]  ;;  %vm326_vm0 = vcmask 261120   ;;  %p313_p1 = scmp.lt.s32.totalorder %s779_s21, 1 }
  0x23   : > { %342 = vmatpush.msra.mxu0 %v321_v0  ;;  %v319_v2 = vld [vmem:[#allocation4 + $0x8] sm:$0xff]  ;;  %v318_v3 = vld [vmem:[#allocation4] sm:$0xff]  ;;  %v317_v4 = vld [vmem:[%s269_s24] sm:$0xff] }
  0x24   : > { %v409_v5 = vld [vmem:[#allocation6 + $0x78] sm:$0xff]  ;;  %v408_v6 = vld [vmem:[#allocation6 + $0x70] sm:$0xff]  ;;  %v407_v7 = vld [vmem:[#allocation6 + $0x68] sm:$0xff]  ;;  %s964_s21 = smov (!%p313_p1, %s779_s21), 1 }
  0x25   : > { %343 = vmatpush.msra.mxu0 %v320_v1  ;;  %414 = vmatpush.msra.mxu1 %v409_v5  ;;  %v406_v8 = vld [vmem:[#allocation6 + $0x60] sm:$0xff]  ;;  %v639_v9 = vld [vmem:[%s948_s2] ss:$0 sm:$0xff]  ;;  %v405_v10 = vld [vmem:[#allocation6 + $0x58] sm:$0xff]  ;;  %s556_s16 = sshll.u32 %s964_s21, 3 }
  0x26   : > { %v404_v11 = vld [vmem:[#allocation6 + $0x50] sm:$0xff]  ;;  %v403_v13 = vld [vmem:[#allocation6 + $0x48] sm:$0xff]  ;;  %v402_v15 = vld [vmem:[#allocation6 + $0x40] sm:$0xff]  ;;  %s316_s30 = scalar_lea.vmem %s951_s5, %s556_s16 }
  0x27   : > { %344 = vmatpush.msra.mxu0 %v319_v2  ;;  %415 = vmatpush.msra.mxu1 %v408_v6  ;;  %v401_v17 = vld [vmem:[#allocation6 + $0x38] sm:$0xff]  ;;  %v400_v19 = vld [vmem:[#allocation6 + $0x30] sm:$0xff]  ;;  %v399_v21 = vld [vmem:[#allocation6 + $0x28] sm:$0xff] }
  0x28   : > { %v398_v24 = vld [vmem:[#allocation6 + $0x20] sm:$0xff]  ;;  %v397_v27 = vld [vmem:[#allocation6 + $0x18] sm:$0xff]  ;;  %v396_v30 = vld [vmem:[#allocation6 + $0x10] sm:$0xff] }
  0x29   : > { %345 = vmatpush.msra.mxu0 %v318_v3  ;;  %416 = vmatpush.msra.mxu1 %v407_v7  ;;  %v395_v33 = vld [vmem:[#allocation6 + $0x8] sm:$0xff]  ;;  %v394_v35 = vld [vmem:[#allocation6] sm:$0xff]  ;;  %v640_v63 = vld [vmem:[%s950_s4] ss:$0 sm:$0xff] }
  0x2a   : > { %557 = vmatmul.msk.f32.vlgmr.msra.gmra.mxu0 %vm326_vm0, %v317_v4 }
  0x2b   : > { %417 = vmatpush.msra.mxu1 %v406_v8 }
  0x2d   : > { %418 = vmatpush.msra.mxu1 %v405_v10 }
  0x2f   : > { %419 = vmatpush.msra.mxu1 %v404_v11 }
  0x31   : > { %420 = vmatpush.msra.mxu1 %v403_v13 }
  0x33   : > { %421 = vmatpush.msra.mxu1 %v402_v15 }
  0x35   : > { %422 = vmatpush.msra.mxu1 %v401_v17 }
  0x37   : > { %423 = vmatpush.msra.mxu1 %v400_v19 }
  0x39   : > { %424 = vmatpush.msra.mxu1 %v399_v21 }
  0x3b   : > { %425 = vmatpush.msra.mxu1 %v398_v24 }
  0x3d   : > { %426 = vmatpush.msra.mxu1 %v397_v27 }
  0x3f   : > { %427 = vmatpush.msra.mxu1 %v396_v30 }
  0x41   : > { %428 = vmatpush.msra.mxu1 %v395_v33 }
  0x43   : > { %429 = vmatpush.msra.mxu1 %v394_v35 }
  0xa7   : > { %v347_v12 = vpop.f32.mrf.mxu0 }
  0xa8   : > { %v348_v14 = vadd.f32 %v639_v9, %v347_v12 }
  0xaa   : > { %v351_v16 = vmul.f32 0.70710677, %v348_v14  ;;  %v350_v60 = vmul.f32 0.5, %v348_v14 }
  0xac   : > { %v352_v18 = vmul.f32 %v351_v16, %v351_v16 }
  0xae   : > { %v353_v20 = vmin.f32 %v352_v18, 16.0 }
  0xb0   : > { %v354_v22 = vmul.f32 2.1237322e-06, %v353_v20  ;;  %v365_v23 = vmul.f32 3.8918573e-05, %v353_v20 }
  0xb2   : > { %v355_v25 = vadd.f32 0.00028619796, %v354_v22  ;;  %v366_v26 = vadd.f32 0.001143296, %v365_v23 }
  0xb4   : > { %v356_v28 = vmul.f32 %v355_v25, %v353_v20  ;;  %v367_v29 = vmul.f32 %v366_v26, %v353_v20 }
  0xb6   : > { %v368_v31 = vadd.f32 0.014752088, %v367_v29  ;;  %v357_v32 = vadd.f32 0.0036580483, %v356_v28 }
  0xb8   : > { %v369_v34 = vmul.f32 %v368_v31, %v353_v20  ;;  %v358_v37 = vmul.f32 %v357_v32, %v353_v20 }
  0xba   : > { %v370_v36 = vadd.f32 0.112945676, %v369_v34  ;;  %v359_v40 = vadd.f32 0.05243302, %v358_v37 }
  0xbc   : > { %v371_v38 = vmul.f32 %v370_v36, %v353_v20  ;;  %v360_v43 = vmul.f32 %v359_v40, %v353_v20 }
  0xbe   : > { %v372_v39 = vadd.f32 0.4994258, %v371_v38  ;;  %v361_v44 = vadd.f32 0.18741608, %v360_v43 }
  0xc0   : > { %v373_v41 = vmul.f32 %v372_v39, %v353_v20  ;;  %v362_v46 = vmul.f32 %v361_v44, %v353_v20 }
  0xc2   : > { %v374_v42 = vadd.f32 1.0, %v373_v41  ;;  %v363_v50 = vadd.f32 1.1283791, %v362_v46 }
  0xc4   : > { %641 = vrcp.f32 %v374_v42  ;;  %v386_v49 = vand.u32 2147483648, %v374_v42  ;;  %v384_v52 = vand.u32 2147483647, %v374_v42  ;;  %vm380_vm2 = vweird.f32 %v374_v42 }
  0xc5   : > { %v364_v55 = vmul.f32 %v363_v50, %v351_v16 }
  0xc6   : > { %v387_v54 = vor.u32 1.1754944e-38, %v386_v49  ;;  %vm385_vm4 = vcmp.eq.f32.partialorder %v384_v52, 8.507059e+37 }
  0xca   : > { %v642_v45 = vpop.eup %641 }
  0xcb   : > { %v376_v47 = vmul.f32 %v642_v45, %v374_v42  ;;  %vm381_vm1 = vweird.f32 %v642_v45 }
  0xcc   : > { %vm382_vm3 = vmor %vm380_vm2, %vm381_vm1 }
  0xcd   : > { %v377_v48 = vsub.f32 1.0, %v376_v47 }
  0xcf   : > { %v378_v51 = vmul.f32 %v642_v45, %v377_v48 }
  0xd1   : > { %v379_v53 = vadd.f32 %v642_v45, %v378_v51 }
  0xd3   : > { %v383_v56 = vsel %vm382_vm3, %v642_v45, %v379_v53 }
  0xd4   : > { %v388_v57 = vsel %vm385_vm4, %v387_v54, %v383_v56 }
  0xd5   : > { %v389_v58 = vmul.f32 %v388_v57, %v364_v55 }
  0xd7   : > { %v558_v59 = vclamps-f32 %v389_v58, 1.0 }
  0xd9   : > { %v392_v61 = vadd.f32 1.0, %v558_v59 }
  0xdb   : > { %v393_v62 = vmul.f32 %v392_v61, %v350_v60 }
  0xdd   : > { %430 = vmatmul.f32.vlgmr.msra.gmra.mxu1 %v393_v62 }
 0x15a   : > { %v431_v0 = vpop.f32.mrf.mxu1 }
 0x15b   : > { %v432_v1 = vadd.f32 %v640_v63, %v431_v0 }
 0x15d   : > { %434 = vst [vmem:[%s316_s30] sm:$0xff] %v432_v1 }
 0x15e PF: > { %s19_s23 = sadd.s32 1, %s787_s23   ;;  %s956_s18 = smov %s771_s19 }
 0x15f   : > { %p16_p2 = scmp.ge.s32.totalorder %s19_s23, 4   ;;  %s957_s19 = smov %s775_s20 }
 0x160   : > { %s958_s20 = smov %s898_s28  ;;  %s959_s21 = smov %s783_s22 }
 0x161   : > { %s960_s22 = smov %s962_s14  ;;  %18 = sbr.rel (!%p16_p2) target bundleno = 5 (0x5), region = 93 }
 0x166   :  { %454 = vsyncpa [#allocation3], 1 }
 0x167   :  { %456 = vsyncpa [#allocation3 + $0x1], 1 }
 0x168   :  { %457 = vsyncpa [#allocation5], 1 }

</bundles_post_ra>
